<compile_context>
chip_gen: v7x
topology: tpu7x:2x2x1
jax: 0.10.0
libtpu: 0.0.40
codegen_flags: <defaults>
</compile_context>

<pallas_src>
import numpy as np
import jax
import jax.numpy as jnp
from jax import lax
from jax.experimental import pallas as pl
from jax.experimental.pallas import tpu as pltpu

# ---------------------------------------------------------------------------
# db5 wavelet filters (the module's only "parameters" — fixed constants).
# ---------------------------------------------------------------------------
_DB5_DEC_LO = np.array(
    [0.003335725285001549, -0.012580751999015526, -0.006241490213011705,
     0.07757149384006515, -0.03224486958502952, -0.24229488706619015,
     0.13842814590110342, 0.7243085284385744, 0.6038292697974729,
     0.160102397974125], dtype=np.float64)
_DB5_DEC_HI = ((-1.0) ** np.arange(10)) * _DB5_DEC_LO[::-1]

_WAVE_CACHE = {}

_TILE_ROWS = 512                    # pixel tile on the sublane axis (streaming kernels)
_TILE_LANE = 512                    # pixel / coefficient tile on the lane axis
_SEP_VMEM_LIMIT = 48 * 1024 * 1024  # < v7x 64 MiB physical, > default scoped limits


def _cdiv(a, b):
    return -(-a // b)


def _wavelet_ops(n):
    """Analysis matrix A (2K, n) for a 1-D symmetric-padded db5 DWT and its exact
    left inverse S = pinv(A) (n, 2K). Built deterministically on host (numpy)."""
    if n in _WAVE_CACHE:
        return _WAVE_CACHE[n]
    filt_len = _DB5_DEC_LO.shape[0]
    pad = filt_len - 1
    idx = np.arange(-pad, n + pad)
    for _ in range(16):  # symmetric (half-sample) reflection, repeated for tiny n
        idx = np.where(idx < 0, -1 - idx, idx)
        idx = np.where(idx >= n, 2 * n - 1 - idx, idx)
    out_len = (n + 2 * pad - filt_len) // 2 + 1
    a_lo = np.zeros((out_len, n), dtype=np.float64)
    a_hi = np.zeros((out_len, n), dtype=np.float64)
    for k in range(out_len):
        for m in range(filt_len):
            a_lo[k, idx[2 * k + m]] += _DB5_DEC_LO[m]
            a_hi[k, idx[2 * k + m]] += _DB5_DEC_HI[m]
    a_full = np.concatenate([a_lo, a_hi], axis=0)       # (2K, n) analysis
    s_full = np.linalg.pinv(a_full)                     # (n, 2K) synthesis (S @ A = I)
    _WAVE_CACHE[n] = (a_full.astype(np.float32), s_full.astype(np.float32), out_len)
    return _WAVE_CACHE[n]


# ---------------------------------------------------------------------------
# Streaming Pallas kernels (pixel axis tiled, accumulators resident in VMEM)
# ---------------------------------------------------------------------------
def _pallas_gram(x2d):
    """G = x2d.T @ x2d  for x2d (P, C), streamed over P (no transpose in HBM)."""
    p, c = x2d.shape
    tk = _TILE_ROWS if p >= _TILE_ROWS else p
    grid = _cdiv(p, tk)

    def kernel(x_ref, o_ref):
        k = pl.program_id(0)

        @pl.when(k == 0)
        def _():
            o_ref[...] = jnp.zeros_like(o_ref)

        rows = lax.broadcasted_iota(jnp.int32, (tk, 1), 0) + k * tk
        blk = jnp.where(rows < p, x_ref[...], 0.0)        # mask ragged last tile
        # x^T x contraction without an explicit in-kernel transpose
        o_ref[...] += lax.dot_general(blk, blk, (((0,), (0,)), ((), ())),
                                      preferred_element_type=jnp.float32)

    return pl.pallas_call(
        kernel,
        grid=(grid,),
        in_specs=[pl.BlockSpec((tk, c), lambda i: (i, 0))],
        out_specs=pl.BlockSpec((c, c), lambda i: (0, 0)),
        out_shape=jax.ShapeDtypeStruct((c, c), jnp.float32),
        compiler_params=pltpu.CompilerParams(dimension_semantics=("arbitrary",)),
    )(x2d.astype(jnp.float32))


def _pallas_resid_moments(x2d, bt):
    """Per-band sum / sum-of-squares of the noise residual W.T = X - X @ B.T,
    streamed over pixels.  x2d (P, C), bt = B.T (C, C) resident."""
    p, c = x2d.shape
    tk = _TILE_ROWS if p >= _TILE_ROWS else p
    grid = _cdiv(p, tk)

    def kernel(x_ref, bt_ref, s1_ref, s2_ref):
        k = pl.program_id(0)

        @pl.when(k == 0)
        def _():
            s1_ref[...] = jnp.zeros_like(s1_ref)
            s2_ref[...] = jnp.zeros_like(s2_ref)

        rows = lax.broadcasted_iota(jnp.int32, (tk, 1), 0) + k * tk
        chunk = jnp.where(rows < p, x_ref[...], 0.0)
        w = chunk - jnp.dot(chunk, bt_ref[...], preferred_element_type=jnp.float32)
        s1_ref[...] += jnp.sum(w, axis=0, keepdims=True)
        s2_ref[...] += jnp.sum(w * w, axis=0, keepdims=True)

    return pl.pallas_call(
        kernel,
        grid=(grid,),
        in_specs=[pl.BlockSpec((tk, c), lambda i: (i, 0)),
                  pl.BlockSpec((c, c), lambda i: (0, 0))],
        out_specs=(pl.BlockSpec((1, c), lambda i: (0, 0)),
                   pl.BlockSpec((1, c), lambda i: (0, 0))),
        out_shape=(jax.ShapeDtypeStruct((1, c), jnp.float32),
                   jax.ShapeDtypeStruct((1, c), jnp.float32)),
        compiler_params=pltpu.CompilerParams(dimension_semantics=("arbitrary",)),
    )(x2d.astype(jnp.float32), bt.astype(jnp.float32))


def _pallas_project_to_pc(x2d, m_proj):
    """pc (C, P) = (x2d @ M).T, streamed over pixel blocks; output is lane-dense
    (pixels on the 128-lane axis) and already channel-first for the DWT."""
    p, c = x2d.shape
    tp = _TILE_ROWS if p >= _TILE_ROWS else p
    grid = _cdiv(p, tp)

    def kernel(x_ref, mt_ref, o_ref):
        # out[j, q] = sum_i M[i, j] * x[q, i]   (NT contraction, both last dims)
        o_ref[...] = lax.dot_general(
            mt_ref[...], x_ref[...], (((1,), (1,)), ((), ())),
            preferred_element_type=jnp.float32)

    return pl.pallas_call(
        kernel,
        grid=(grid,),
        in_specs=[pl.BlockSpec((tp, c), lambda i: (i, 0)),
                  pl.BlockSpec((c, c), lambda i: (0, 0))],
        out_specs=pl.BlockSpec((c, tp), lambda i: (0, i)),
        out_shape=jax.ShapeDtypeStruct((c, p), jnp.float32),
        compiler_params=pltpu.CompilerParams(dimension_semantics=("parallel",)),
    )(x2d.astype(jnp.float32), jnp.transpose(m_proj).astype(jnp.float32))


def _pallas_project_from_pc(wp, rec2d):
    """y (C, P) = Wp @ rec2d  with Wp (C, rank) resident, rec2d (rank, P) streamed
    over lane-dense pixel blocks (fused un-whitening is folded into Wp)."""
    c, r = wp.shape
    _, p = rec2d.shape
    tp = _TILE_LANE if p >= _TILE_LANE else p
    grid = _cdiv(p, tp)

    def kernel(wp_ref, r_ref, o_ref):
        o_ref[...] = jnp.dot(wp_ref[...], r_ref[...],
                             preferred_element_type=jnp.float32)

    return pl.pallas_call(
        kernel,
        grid=(grid,),
        in_specs=[pl.BlockSpec((c, r), lambda i: (0, 0)),
                  pl.BlockSpec((r, tp), lambda i: (0, i))],
        out_specs=pl.BlockSpec((c, tp), lambda i: (0, i)),
        out_shape=jax.ShapeDtypeStruct((c, p), jnp.float32),
        compiler_params=pltpu.CompilerParams(dimension_semantics=("parallel",)),
    )(wp.astype(jnp.float32), rec2d.astype(jnp.float32))


def _pallas_sure_moments(v_cp, t2s):
    """Streaming SURE statistics over the (C, n_coeffs) coefficient matrix.
    Returns per-channel, per-threshold sum(v^2 * (v^2>t^2)), count(v^2>t^2) and the
    per-channel total sum(v^2).  (sure = (t^2+2)*count - sum is formed on host.)"""
    c, n = v_cp.shape
    tn = _TILE_LANE if n >= _TILE_LANE else n
    grid = _cdiv(n, tn)
    n_t = len(t2s)

    def kernel(v_ref, sgt_ref, cgt_ref, tot_ref):
        k = pl.program_id(0)

        @pl.when(k == 0)
        def _():
            sgt_ref[...] = jnp.zeros_like(sgt_ref)
            cgt_ref[...] = jnp.zeros_like(cgt_ref)
            tot_ref[...] = jnp.zeros_like(tot_ref)

        cols = lax.broadcasted_iota(jnp.int32, (1, tn), 1) + k * tn
        v = jnp.where(cols < n, v_ref[...], 0.0)          # ragged last tile -> zeros
        v2 = v * v
        tot_ref[...] += jnp.sum(v2, axis=1, keepdims=True)
        s_cols, c_cols = [], []
        for t2 in t2s:                                     # 15-way static unroll (VPU)
            gt = (v2 > t2).astype(jnp.float32)
            s_cols.append(jnp.sum(v2 * gt, axis=1, keepdims=True))
            c_cols.append(jnp.sum(gt, axis=1, keepdims=True))
        sgt_ref[...] += jnp.concatenate(s_cols, axis=1)    # one wide store per step
        cgt_ref[...] += jnp.concatenate(c_cols, axis=1)

    return pl.pallas_call(
        kernel,
        grid=(grid,),
        in_specs=[pl.BlockSpec((c, tn), lambda i: (0, i))],
        out_specs=(pl.BlockSpec((c, n_t), lambda i: (0, 0)),
                   pl.BlockSpec((c, n_t), lambda i: (0, 0)),
                   pl.BlockSpec((c, 1), lambda i: (0, 0))),
        out_shape=(jax.ShapeDtypeStruct((c, n_t), jnp.float32),
                   jax.ShapeDtypeStruct((c, n_t), jnp.float32),
                   jax.ShapeDtypeStruct((c, 1), jnp.float32)),
        compiler_params=pltpu.CompilerParams(dimension_semantics=("arbitrary",)),
    )(v_cp.astype(jnp.float32))


# ---------------------------------------------------------------------------
# Separable 2-D db5 DWT / inverse DWT (matrix-operator form, channel-blocked)
# ---------------------------------------------------------------------------
def _choose_channel_block(ri, ci, ro, co, max_cb=16, budget=28 * 1024 * 1024):
    """Channels per grid step so (blocks + operators + tmp, double-buffered) fits VMEM."""
    fixed = 2 * 4 * (ro * ri + ci * co)                       # operator matrices
    per_ch = 4 * (2 * ri * ci + 2 * ro * co + ri * co)        # in + out (2x buf) + tmp
    avail = budget - fixed
    if avail < per_ch:
        return 1
    return int(max(1, min(max_cb, avail // per_ch)))
# TODO(synk): for very large level-1 frames (ri/ci >~ 2k) the dense wavelet operator
# itself approaches the VMEM budget; a banded / 10-tap convolution formulation would be
# needed there (kept in matrix form here — exact and fine at these block sizes).


def _sep_forward(x_chw, a_r, a_c):
    """out[c] = A_r @ x[c] @ A_c.T for every channel, CB channels per grid step."""
    ch, ri, ci = x_chw.shape
    ro, co = a_r.shape[0], a_c.shape[0]
    cb = min(ch, _choose_channel_block(ri, ci, ro, co))
    grid = _cdiv(ch, cb)
    fold = (ri % 8 == 0)   # fold channels into M for the column matmul when aligned

    def kernel(x_ref, mr_ref, mct_ref, o_ref):
        mr = mr_ref[...]
        mct = mct_ref[...]
        if fold:
            xv = x_ref[...].reshape(cb * ri, ci)
            t = jnp.dot(xv, mct, preferred_element_type=jnp.float32)
            t = t.reshape(cb, ri, co)
            for cc in range(cb):
                o_ref[cc] = jnp.dot(mr, t[cc], preferred_element_type=jnp.float32)
        else:
            for cc in range(cb):
                t = jnp.dot(x_ref[cc], mct, preferred_element_type=jnp.float32)
                o_ref[cc] = jnp.dot(mr, t, preferred_element_type=jnp.float32)

    return pl.pallas_call(
        kernel,
        grid=(grid,),
        in_specs=[pl.BlockSpec((cb, ri, ci), lambda i: (i, 0, 0)),
                  pl.BlockSpec((ro, ri), lambda i: (0, 0)),
                  pl.BlockSpec((ci, co), lambda i: (0, 0))],
        out_specs=pl.BlockSpec((cb, ro, co), lambda i: (i, 0, 0)),
        out_shape=jax.ShapeDtypeStruct((ch, ro, co), jnp.float32),
        compiler_params=pltpu.CompilerParams(
            dimension_semantics=("parallel",),
            vmem_limit_bytes=_SEP_VMEM_LIMIT),
    )(x_chw.astype(jnp.float32),
      jnp.asarray(a_r, jnp.float32),
      jnp.asarray(np.ascontiguousarray(a_c.T), jnp.float32))


def _sep_inverse(cfull, ll, s_r, s_c, out_ch):
    """out[c] = S_r @ X_c @ S_c.T where X_c is cfull[c] with its LL corner replaced by
    ll[c].  The replacement is injected algebraically inside the kernel
    (out = S_r C S_c.T + S_r[:,:kr] (ll - LL) S_c[:,:kc].T) — no HBM .at[].set copy."""
    _, r2, c2 = cfull.shape
    kr, kc = ll.shape[1], ll.shape[2]
    ro, co = s_r.shape[0], s_c.shape[0]
    cb = min(out_ch, _choose_channel_block(r2, c2, ro, co))
    grid = _cdiv(out_ch, cb)

    def kernel(c_ref, ll_ref, sr_ref, sct_ref, o_ref):
        sr = sr_ref[...]
        sct = sct_ref[...]
        sr_lo = sr[:, :kr]
        sct_lo = sct[:kc, :]
        for cc in range(cb):
            xc = c_ref[cc]                                   # (2kr, 2kc)
            diff = ll_ref[cc] - xc[:kr, :kc]                 # (kr, kc)
            t_full = jnp.dot(xc, sct, preferred_element_type=jnp.float32)
            t_ll = jnp.dot(diff, sct_lo, preferred_element_type=jnp.float32)
            o_ref[cc] = (jnp.dot(sr, t_full, preferred_element_type=jnp.float32)
                         + jnp.dot(sr_lo, t_ll, preferred_element_type=jnp.float32))

    return pl.pallas_call(
        kernel,
        grid=(grid,),
        in_specs=[pl.BlockSpec((cb, r2, c2), lambda i: (i, 0, 0)),
                  pl.BlockSpec((cb, kr, kc), lambda i: (i, 0, 0)),
                  pl.BlockSpec((ro, r2), lambda i: (0, 0)),
                  pl.BlockSpec((c2, co), lambda i: (0, 0))],
        out_specs=pl.BlockSpec((cb, ro, co), lambda i: (i, 0, 0)),
        out_shape=jax.ShapeDtypeStruct((out_ch, ro, co), jnp.float32),
        compiler_params=pltpu.CompilerParams(
            dimension_semantics=("parallel",),
            vmem_limit_bytes=_SEP_VMEM_LIMIT),
    )(cfull.astype(jnp.float32), ll.astype(jnp.float32),
      jnp.asarray(s_r, jnp.float32),
      jnp.asarray(np.ascontiguousarray(s_c.T), jnp.float32))


# ---------------------------------------------------------------------------
# HyRes forward
# ---------------------------------------------------------------------------
def hyres_forward(x, decomp_level=5, min_iter=2):
    x = jnp.asarray(x, jnp.float32)
    og_rows, og_cols, og_channels = x.shape
    p0 = og_rows * og_cols

    # ---- additive hyperspectral noise estimation (streaming gram + residual) ----
    # TODO(synk): reference runs this regression in float64; the TPU path is float32.
    x0_2d = x.reshape(p0, og_channels)
    ddp = _pallas_gram(x0_2d)                                # (C, C) == Y @ Y.T
    eye = jnp.eye(og_channels, dtype=jnp.float32)
    ddpi = jnp.linalg.inv(ddp + 1e-6 * eye)                  # diagonal regularization
    d0 = ddp - jnp.diag(jnp.diag(ddp))                       # column i == RRa_i
    m1 = ddpi @ d0
    bcol = m1 - ddpi * (jnp.diag(m1) / jnp.diag(ddpi))[None, :]
    bcol = bcol - jnp.diag(jnp.diag(bcol))                   # beta_i[i] = 0 (cols = beta_i)
    s1, s2 = _pallas_resid_moments(x0_2d, bcol)              # bcol == B.T
    n = float(p0)
    var = jnp.maximum((s2[0] - s1[0] * s1[0] / n) / (n - 1.0), 0.0)

    eps = 1e-30
    omega1 = (jnp.sqrt(var) + eps) ** 2                      # (C,)

    # ---- spatial padding (mirrors the reference: gated only on the row count) ----
    blk = 2 ** decomp_level
    padded = (og_rows % blk) != 0
    if padded:
        x = jnp.pad(x, ((0, blk - og_rows % blk), (0, blk - og_cols % blk), (0, 0)),
                    mode="symmetric")
    p_rows, p_cols, p_ch = x.shape
    n_pix = p_rows * p_cols
    x_pad2d = x.reshape(n_pix, p_ch)

    # ---- PCA via whitened gram + eigh (replaces the thin SVD) ----
    # TODO(synk): eigh / inv on the tiny CxC matrices have no Pallas equivalent (XLA).
    gram_pad = ddp if not padded else _pallas_gram(x_pad2d)
    w_inv_sqrt = omega1 ** -0.5
    gw = gram_pad * (w_inv_sqrt[:, None] * w_inv_sqrt[None, :])
    gw = 0.5 * (gw + gw.T)
    _, evecs = jnp.linalg.eigh(gw)
    v = evecs[:, ::-1]                                       # descending eigenvalue order
    m_proj = w_inv_sqrt[:, None] * v                         # x_pad2d @ m_proj == U * S
    pc_cp = _pallas_project_to_pc(x_pad2d, m_proj)           # (C, P) lane-dense
    pc_chw = pc_cp.reshape(p_ch, p_rows, p_cols)

    xmax = jnp.max(x)                                        # traced (no host sync)
    xmin = jnp.min(x)

    # ---- multi-level separable db5 DWT (symmetric padding), per PCA channel ----
    levels = []
    cur = pc_chw
    for _ in range(decomp_level):
        rin, cin = cur.shape[1], cur.shape[2]
        a_r, s_r, kr = _wavelet_ops(rin)
        a_c, s_c, kc = _wavelet_ops(cin)
        cfull = _sep_forward(cur, a_r, a_c)                  # (C, 2kr, 2kc)
        levels.append([cfull, kr, kc, s_r, s_c])
        cur = cfull[:, :kr, :kc]                             # LL feeds the next level
    for lv in levels:
        lv[0] = jnp.nan_to_num(lv[0], nan=0.0, posinf=xmax, neginf=xmin)

    # ---- coefficients, channel-first (no transpose) -> streaming SURE moments ----
    kr5, kc5 = levels[-1][1], levels[-1][2]
    pieces = [levels[-1][0][:, :kr5, :kc5].reshape(p_ch, -1)]      # final LL
    for cfull, kr, kc, _, _ in levels:
        pieces.append(cfull[:, :kr, kc:].reshape(p_ch, -1))        # LH
        pieces.append(cfull[:, kr:, :kc].reshape(p_ch, -1))        # HL
        pieces.append(cfull[:, kr:, kc:].reshape(p_ch, -1))        # HH
    v_cp = jnp.concatenate(pieces, axis=1)                         # (C, n_coeffs)
    n_coeffs = int(v_cp.shape[1])
    n_xyz = int(v_cp.size)

    tuning = np.linspace(0.0, float(np.sqrt(np.log(n_coeffs))), 15)
    t2s = tuple(float(t) * float(t) for t in tuning)
    sgt_d, cgt_d, tot_d = _pallas_sure_moments(v_cp, t2s)
    sgt, cgt, tot = jax.device_get((sgt_d, cgt_d, tot_d))          # single host sync
    sgt = np.asarray(sgt, np.float64)
    cgt = np.asarray(cgt, np.float64)
    norm_v = float(np.asarray(tot, np.float64).sum())
    # sure(t) = ||min(|v|,t)||^2 + 2*#{|v|>t} - ||v||^2  ==  (t^2+2)*count - sum_gt
    sure_raw = (np.asarray(t2s, np.float64)[None, :] + 2.0) * cgt - sgt   # (C, n_t)

    # ---- SURE-based rank selection (host loop mirrors the reference control flow) ----
    # NOTE: the reference's per-column soft-thresholding of v_dwt_permed is never written
    # back to the subbands used by the inverse DWT, so it does not affect the output.
    cum_cols, min_sure, rank = [], [], 0
    for r in range(og_channels):
        col = sure_raw[r].copy()
        if cum_cols:
            col = col + np.sum(np.stack(cum_cols, axis=0), axis=0)
        col = col + norm_v - n_xyz
        cum_cols.append(col)
        min_sure.append(float(col.min()))
        rank = r
        if r > min_iter and (not (min_sure[r] > min_sure[r - 1] * 2)):
            break
    rank = max(rank, 1)

    # ---- inverse DWT on the first `rank` PCA channels (LL injected in-kernel) ----
    rec = None
    for cfull, kr, kc, s_r, s_c in reversed(levels):
        ll = rec if rec is not None else cfull[:rank, :kr, :kc]
        rec = _sep_inverse(cfull, ll, s_r, s_c, rank)              # (rank, rin, cin)

    # ---- project back to spectral space + un-whiten (fused, lane-dense (C, P)) ----
    wp = (omega1 ** 0.5)[:, None] * v[:, :rank]                    # (C, rank)
    y_cp = _pallas_project_from_pc(wp, rec.reshape(rank, n_pix))   # (C, P)
    y_restored = jnp.transpose(y_cp.reshape(og_channels, p_rows, p_cols), (1, 2, 0))
    return y_restored[:og_rows, :og_cols, :]


# ---------------------------------------------------------------------------
if __name__ == "__main__":
    key = jax.random.PRNGKey(0)
    R, C, B = 32, 32, 8
    k1, k2, k3 = jax.random.split(key, 3)
    # low-rank spectral signal + additive noise (typical HyRes use case)
    signal = jax.random.normal(k1, (R, C, 3)) @ jax.random.normal(k2, (3, B))
    noise = 0.1 * jax.random.normal(k3, (R, C, B))
    x = (signal + noise).astype(jnp.float32)

    out = hyres_forward(x, decomp_level=5, min_iter=2)
    out = jax.block_until_ready(out)
    assert out.shape == (R, C, B)
    assert bool(jnp.isfinite(out).all())
    print("KERNEL_OK")
</pallas_src>

<mosaic_0001>
module attributes {stable_mosaic.version = 11 : i64} {
  func.func @kernel(%arg0: i32, %arg1: memref<512x8xf32, #tpu.memory_space<vmem>>, %arg2: memref<8x8xf32, #tpu.memory_space<vmem>>) attributes {dimension_semantics = [#tpu.dimension_semantics<arbitrary>], iteration_bounds = array<i64: 2>, scalar_prefetch = 0 : i64, scratch_operands = 0 : i64, tpu.core_type = #tpu.core_type<tc>, window_params = [{transform_indices = @transform_0, window_bounds = array<i64: 512, 8>}, {pipeline_mode = #tpu.pipeline_mode<synchronous>, transform_indices = @transform_1, window_bounds = array<i64: 8, 8>}]} {
    %c0_i32 = arith.constant 0 : i32
    %0 = arith.cmpi eq, %arg0, %c0_i32 : i32
    %1 = arith.extui %0 : i1 to i32
    %c0_i32_0 = arith.constant 0 : i32
    %2 = arith.cmpi ne, %1, %c0_i32_0 : i32
    scf.if %2 {
      %cst_7 = arith.constant 0.000000e+00 : f32
      %18 = vector.broadcast %cst_7 : f32 to vector<8x8xf32>
      %c0_8 = arith.constant 0 : index
      %c0_9 = arith.constant 0 : index
      %19 = vector.load %arg2[%c0_8, %c0_9] : memref<8x8xf32, #tpu.memory_space<vmem>>, vector<8x8xf32>
      tpu.vector_store %arg2[%c0_8, %c0_9], %18 {strides = array<i32>} : memref<8x8xf32, #tpu.memory_space<vmem>>, vector<8x8xf32>,
    } else {
    }
    %3 = tpu.iota {dimensions = array<i32: 0>} : vector<512x1xi32>
    %c512_i32 = arith.constant 512 : i32
    %4 = arith.muli %arg0, %c512_i32 : i32
    %5 = vector.broadcast %4 : i32 to vector<512x1xi32>
    %6 = arith.addi %3, %5 : vector<512x1xi32>
    %c1024_i32 = arith.constant 1024 : i32
    %7 = vector.broadcast %c1024_i32 : i32 to vector<512x1xi32>
    %8 = arith.cmpi slt, %6, %7 : vector<512x1xi32>
    %c0 = arith.constant 0 : index
    %c0_1 = arith.constant 0 : index
    %9 = vector.load %arg1[%c0, %c0_1] : memref<512x8xf32, #tpu.memory_space<vmem>>, vector<512x8xf32>
    %cst = arith.constant 0.000000e+00 : f32
    %10 = vector.shape_cast %8 : vector<512x1xi1> to vector<512x1xi1>
    %11 = vector.broadcast %10 : vector<512x1xi1> to vector<512x8xi1>
    %12 = vector.broadcast %cst : f32 to vector<512x8xf32>
    %13 = arith.select %11, %9, %12 : vector<512x8xi1>, vector<512x8xf32>
    %c0_2 = arith.constant 0 : index
    %c0_3 = arith.constant 0 : index
    %14 = vector.load %arg2[%c0_2, %c0_3] : memref<8x8xf32, #tpu.memory_space<vmem>>, vector<8x8xf32>
    %cst_4 = arith.constant dense<0.000000e+00> : vector<8x8xf32>
    %15 = tpu.matmul %13, %13, %cst_4 {dimension_numbers = #tpu.dot_dimension_numbers<[0], [0], [1], [1], [0, 1, 1, 1], [], []>} : vector<512x8xf32>, vector<512x8xf32>, vector<8x8xf32> -> vector<8x8xf32>
    %16 = arith.addf %14, %15 : vector<8x8xf32>
    %c0_5 = arith.constant 0 : index
    %c0_6 = arith.constant 0 : index
    %17 = vector.load %arg2[%c0_5, %c0_6] : memref<8x8xf32, #tpu.memory_space<vmem>>, vector<8x8xf32>
    tpu.vector_store %arg2[%c0_5, %c0_6], %16 {strides = array<i32>} : memref<8x8xf32, #tpu.memory_space<vmem>>, vector<8x8xf32>,
    return
  }
  func.func @transform_0(%arg0: i32) -> (i32, i32) {
    %c0_i32 = arith.constant 0 : i32
    %c0_i32_0 = arith.constant 0 : i32
    return %arg0, %c0_i32 : i32, i32
  }
  func.func @transform_1(%arg0: i32) -> (i32, i32) {
    %c0_i32 = arith.constant 0 : i32
    %c0_i32_0 = arith.constant 0 : i32
    %c0_i32_1 = arith.constant 0 : i32
    return %c0_i32, %c0_i32_0 : i32, i32
  }
}

</mosaic_0001>

<bundles_post_ra>
// kernel: tpu_custom_call.1
= control target key start
LH: loop header
LB: loop body
LE: loop exit
PB: predicated region body
PF: predicated region fallthrough
CT: control target
= control target key end

     0   :  { %6 = vsyncpa [#allocation3], 0  ;;  %s1262_s6 = smov 0   ;;  %s1740_s0 = inlined_call_operand.vmem [shape: f32[1024,8], index: 0, kind: input, shape index: {}]   ;;  %s1741_s1 = inlined_call_operand.hbm [shape: f32[8,8], index: 1, kind: output, shape index: {}]  }
   0x1 LB: > { %s1268_s7 = sadd.s32 4294967295, %s1248_s6   ;;  %p883_p0 = scmp.ge.s32.totalorder %s1248_s6, 1  ;;  %s1248_s6 = sphi %s1262_s6, %s12_s6  }
   0x2   : > { %p84_p1 = scmp.lt.s32.totalorder %s1248_s6, 3 }
   0x4   : > { %p85_p2 = pnand %p883_p0, %p84_p1 }
   0x5   : > { %s884_s8 = sshll.u32 (!%p85_p2), %s1268_s7, 6  ;;  %p886_p4 = scmp.ne.s32.totalorder (!%p85_p2), %s1268_s7, 0 }
   0x6   : > { %88 = sbr.rel (%p85_p2) target bundleno = 413 (0x19d), region = 24  ;;  %p100_p3 = scmp.lt.s32.totalorder (!%p85_p2), %s884_s8, 127 }
   0xd   : > { %s1743_s8 = smov (!%p100_p3, %s884_s8), 127  ;;  %108 = sbr.rel (%p886_p4) target bundleno = 20 (0x14), region = 28 }
   0xe   : > { %s885_s9 = sshll.u32 %s1743_s8, 3  ;;  %vm109_vm0 = vcmask (!%p886_p4), 64512   ;;  %v1250_v0 = vmov (!%p886_p4), 0.0  }
   0xf   : > { %s1276_s12 = scalar_lea.vmem %s1740_s0, %s885_s9  ;;  %110 = vst.msk [vmem:[#allocation2] sm:$0xff] (!%p886_p4), %vm109_vm0, %v1250_v0 }
  0x14 PF: > { %v111_v1 = vlaneseq  ;;  %s887_s13 = sshll.u32 %s1268_s7, 9  ;;  %v322_v2 = vld [vmem:[%s1276_s12 + $0x80] sm:$0xff]  ;;  %v1288_v6 = vld [vmem:[%s1276_s12 + $0x8] sm:$0xff]  ;;  %v1340_v46 = vld [vmem:[%s1276_s12 + $0x90] sm:$0xff]  ;;  %s1251_s14 = smov [#allocation2]  }
  0x15   : > { %v354_v3 = vld [vmem:[%s1276_s12 + $0x180] sm:$0xff]  ;;  %v1282_v4 = vstv %s887_s13  ;;  %v1296_v9 = vld [vmem:[%s1276_s12 + $0x108] sm:$0xff]  ;;  %v325_v49 = vld [vmem:[%s1276_s12 + $0x98] sm:$0xff]  ;;  %s841_s15 = sshll.u32 %s1251_s14, 4  ;;  %p1126_p5 = scmp.eq.s32.totalorder %s1268_s7, 1  ;;  %s842_s15 = int_to_ptr.vmem [resolvable:$true] %s841_s15 }
  0x16   : > { %v1285_v5 = vld [vmem:[%s1276_s12] sm:$0xff]  ;;  %v1293_v8 = vshrl.u32 %v111_v1, 7  ;;  %v323_v10 = vld [vmem:[%s1276_s12 + $0x88] sm:$0xff]  ;;  %v1349_v51 = vld [vmem:[%s1276_s12 + $0x190] sm:$0xff]  ;;  %v1032_v55 = vpack.c.bf16 %v325_v49, %v1340_v46  ;;  %s1212_s16 = scalar_lea.vmem %s842_s15, 128  ;;  %p1219_p9 = scmp.lt.s32.totalorder %s842_s15, %s842_s15 }
  0x17   : > { %v1291_v7 = vld [vmem:[%s1276_s12 + $0x100] sm:$0xff]  ;;  %v355_v11 = vld [vmem:[%s1276_s12 + $0x188] sm:$0xff]  ;;  %v1029_v12 = vpack.c.bf16 %v1288_v6, %v1285_v5  ;;  %v1026_v14 = vpack.c.bf16 %v323_v10, %v322_v2  ;;  %v1354_v54 = vld [vmem:[%s1276_s12 + $0x198] sm:$0xff]  ;;  %p1213_p6 = scmp.ne.s32.totalorder %s842_s15, %s1212_s16  ;;  %p1220_p10 = scmp.lt.s32.totalorder %s1212_s16, %s1212_s16 }
  0x18   : > { %v1077_v13 = vpack.c.bf16 %v1296_v9, %v1291_v7  ;;  %v1074_v15 = vpack.c.bf16 %v355_v11, %v354_v3  ;;  %v128_v16 = vadd.s32 128, %v1293_v8  ;;  %v160_v17 = vadd.s32 384, %v1293_v8  ;;  %v1364_v58 = vld [vmem:[%s1276_s12 + $0x10] sm:$0xff] }
  0x19   : > { %v144_v18 = vadd.s32 256, %v1293_v8  ;;  %v1309_v19 = vadd.s32 %v1282_v4, %v1293_v8  ;;  %v129_v20 = vadd.s32 136, %v1293_v8  ;;  %v161_v21 = vadd.s32 392, %v1293_v8  ;;  %v1367_v59 = vld [vmem:[%s1276_s12 + $0x110] sm:$0xff]  ;;  %p1214_p7 = pnand %p1213_p6, %p1126_p5  ;;  %p1221_p11 = por %p1220_p10, %p1219_p9 }
  0x1a   : > { %v113_v22 = vadd.s32 8, %v1293_v8  ;;  %v145_v23 = vadd.s32 264, %v1293_v8  ;;  %v194_v24 = vadd.s32 %v1282_v4, %v128_v16  ;;  %v226_v25 = vadd.s32 %v1282_v4, %v160_v17 }
  0x1b   : > { %v210_v26 = vadd.s32 %v1282_v4, %v144_v18  ;;  %vm242_vm1 = vcmp.lt.s32.totalorder %v1309_v19, 1024  ;;  %v195_v28 = vadd.s32 %v1282_v4, %v129_v20  ;;  %v227_v29 = vadd.s32 %v1282_v4, %v161_v21  ;;  %p1215_p8 = pneg %p1214_p7 }
  0x1c   : > { %v498_v27 = vsel %vm242_vm1, %v1285_v5, 0.0  ;;  %v179_v30 = vadd.s32 %v1282_v4, %v113_v22  ;;  %vm258_vm2 = vcmp.lt.s32.totalorder %v194_v24, 1024  ;;  %vm290_vm3 = vcmp.lt.s32.totalorder %v226_v25, 1024 }
  0x1d   : > { %vm274_vm4 = vcmp.lt.s32.totalorder %v210_v26, 1024  ;;  %v211_v31 = vadd.s32 %v1282_v4, %v145_v23  ;;  %v514_v32 = vsel %vm258_vm2, %v322_v2, 0.0  ;;  %v546_v33 = vsel %vm290_vm3, %v354_v3, 0.0  ;;  %v326_v26 = vld [vmem:[%s1276_s12 + $0xa0] sm:$0xff]  ;;  %p1222_p12 = pnand %p1221_p11, %p1215_p8 }
  0x1e   : > { %v530_v34 = vsel %vm274_vm4, %v1291_v7, 0.0  ;;  %vm259_vm5 = vcmp.lt.s32.totalorder %v195_v28, 1024  ;;  %v1138_v35 = vpack.i.bf16 %v546_v33, %v514_v32  ;;  %vm291_vm6 = vcmp.lt.s32.totalorder %v227_v29, 1024  ;;  %v1432_v32 = vld [vmem:[%s1276_s12 + $0x120] sm:$0xff] }
  0x1f   : > { %v1175_v36 = vpack.i.bf16 %v530_v34, %v498_v27  ;;  %v515_v37 = vsel %vm259_vm5, %v323_v10, 0.0  ;;  %v547_v38 = vsel %vm291_vm6, %v355_v11, 0.0  ;;  %vm243_vm7 = vcmp.lt.s32.totalorder %v179_v30, 1024  ;;  %vm1027_vm9 = vmpackc.low %vm259_vm5, %vm258_vm2  ;;  %v358_v27 = vld [vmem:[%s1276_s12 + $0x1a0] sm:$0xff] }
  0x20   : > { %vm275_vm8 = vcmp.lt.s32.totalorder %v211_v31, 1024  ;;  %v130_v39 = vadd.s32 144, %v1293_v8  ;;  %1139 = vxpose.xlu0.b32.start [1/16] (narrow) %v1138_v35, 8  ;;  %v1140_v40 = vpack.i.bf16 %v547_v38, %v515_v37  ;;  %v499_v41 = vsel %vm243_vm7, %v1288_v6, 0.0  ;;  %vm1075_vm10 = vmpackc.low %vm291_vm6, %vm290_vm3  ;;  %1028 = vmatprep.subr.msk.bf16.mxu0 %vm1027_vm9, %v1026_v14  ;;  %v341_v14 = vld [vmem:[%s1276_s12 + $0x118] sm:$0xff]  ;;  %v1429_v31 = vld [vmem:[%s1276_s12 + $0x20] sm:$0xff] }
  0x21   : > { %1176 = vxpose.xlu1.b32.start [1/16] (narrow) %v1175_v36, 8  ;;  %v531_v42 = vsel %vm275_vm8, %v1296_v9, 0.0  ;;  %v162_v43 = vadd.s32 400, %v1293_v8  ;;  %v114_v47 = vadd.s32 16, %v1293_v8  ;;  %v146_v48 = vadd.s32 272, %v1293_v8  ;;  %1076 = vmatprep.subr.msk.bf16.mxu1 %vm1075_vm10, %v1074_v15  ;;  %vm1030_vm13 = vmpackc.low %vm243_vm7, %vm242_vm1  ;;  %v327_v38 = vld [vmem:[%s1276_s12 + $0xa8] sm:$0xff] }
  0x22   : > { %v1177_v44 = vpack.i.bf16 %v531_v42, %v499_v41  ;;  %v196_v45 = vadd.s32 %v1282_v4, %v130_v39  ;;  %v131_v52 = vadd.s32 152, %v1293_v8  ;;  %v163_v53 = vadd.s32 408, %v1293_v8  ;;  %1031 = vmatpush3.bf16.msk.msra.mxu0 %vm1030_vm13, %v1029_v12  ;;  %vm1078_vm0 = vmpackc.low %vm275_vm8, %vm274_vm4  ;;  %v309_v12 = vld [vmem:[%s1276_s12 + $0x18] sm:$0xff] }
  0x23   : > { %v1346_v50 = vadd.s32 %v1282_v4, %v162_v43  ;;  %v1358_v56 = vadd.s32 %v1282_v4, %v114_v47  ;;  %v1361_v57 = vadd.s32 %v1282_v4, %v146_v48  ;;  %v1080_v60 = vpack.c.bf16 %v1354_v54, %v1349_v51  ;;  %1079 = vmatpush3.bf16.msk.msra.mxu1 %vm1078_vm0, %v1077_v13  ;;  %v359_v43 = vld [vmem:[%s1276_s12 + $0x1a8] sm:$0xff] }
  0x24   : > { %vm260_vm11 = vcmp.lt.s32.totalorder %v196_v45, 1024  ;;  %1141 = vxpose.xlu0.b32.cont [2/16] (narrow) %v1140_v40, 8  ;;  %v197_v62 = vadd.s32 %v1282_v4, %v131_v52  ;;  %v229_v63 = vadd.s32 %v1282_v4, %v163_v53  ;;  %v115_v1 = vadd.s32 24, %v1293_v8  ;;  %v311_v47 = vld [vmem:[%s1276_s12 + $0x28] sm:$0xff] }
  0x25   : > { %1178 = vxpose.xlu1.b32.cont [2/16] (narrow) %v1177_v44, 8  ;;  %vm292_vm12 = vcmp.lt.s32.totalorder %v1346_v50, 1024  ;;  %v516_v61 = vsel %vm260_vm11, %v1340_v46, 0.0  ;;  %vm244_vm14 = vcmp.lt.s32.totalorder %v1358_v56, 1024  ;;  %vm276_vm15 = vcmp.lt.s32.totalorder %v1361_v57, 1024 }
  0x26   : > { %v548_v0 = vsel %vm292_vm12, %v1349_v51, 0.0  ;;  %v500_v3 = vsel %vm244_vm14, %v1364_v58, 0.0  ;;  %v532_v10 = vsel %vm276_vm15, %v1367_v59, 0.0  ;;  %vm261_vm1 = vcmp.lt.s32.totalorder %v197_v62, 1024  ;;  %v343_v51 = vld [vmem:[%s1276_s12 + $0x128] sm:$0xff] }
  0x27   : > { %v1142_v2 = vpack.i.bf16 %v548_v0, %v516_v61  ;;  %v1179_v11 = vpack.i.bf16 %v532_v10, %v500_v3  ;;  %vm293_vm2 = vcmp.lt.s32.totalorder %v229_v63, 1024  ;;  %v517_v5 = vsel %vm261_vm1, %v325_v49, 0.0  ;;  %vm1033_vm4 = vmpackc.low %vm261_vm1, %vm260_vm11  ;;  %v328_v61 = vld [vmem:[%s1276_s12 + $0xb0] sm:$0xff] }
  0x28   : > { %v147_v6 = vadd.s32 280, %v1293_v8  ;;  %v549_v15 = vsel %vm293_vm2, %v1354_v54, 0.0  ;;  %v181_v16 = vadd.s32 %v1282_v4, %v115_v1  ;;  %v1035_v17 = vpack.c.bf16 %v309_v12, %v1364_v58  ;;  %1034 = vmatprep.subr.msk.bf16.mxu0 %vm1033_vm4, %v1032_v55  ;;  %vm1081_vm6 = vmpackc.low %vm293_vm2, %vm292_vm12 }
  0x29   : > { %1143 = vxpose.xlu0.b32.cont [3/16] (narrow) %v1142_v2, 8  ;;  %v1083_v7 = vpack.c.bf16 %v341_v14, %v1367_v59  ;;  %1180 = vxpose.xlu1.b32.cont [3/16] (narrow) %v1179_v11, 8  ;;  %v1144_v9 = vpack.i.bf16 %v549_v15, %v517_v5  ;;  %v132_v18 = vadd.s32 160, %v1293_v8  ;;  %v164_v19 = vadd.s32 416, %v1293_v8  ;;  %v360_v2 = vld [vmem:[%s1276_s12 + $0x1b0] sm:$0xff] }
  0x2a   : > { %v213_v13 = vadd.s32 %v1282_v4, %v147_v6  ;;  %vm245_vm3 = vcmp.lt.s32.totalorder %v181_v16, 1024  ;;  %v116_v20 = vadd.s32 32, %v1293_v8  ;;  %v148_v21 = vadd.s32 288, %v1293_v8  ;;  %1082 = vmatprep.subr.msk.bf16.mxu1 %vm1081_vm6, %v1080_v60  ;;  %v1483_v6 = vld [vmem:[%s1276_s12 + $0x30] sm:$0xff] }
  0x2b   : > { %v133_v22 = vadd.s32 168, %v1293_v8  ;;  %v501_v23 = vsel %vm245_vm3, %v309_v12, 0.0  ;;  %v198_v24 = vadd.s32 %v1282_v4, %v132_v18  ;;  %v230_v25 = vadd.s32 %v1282_v4, %v164_v19  ;;  %vm1036_vm9 = vmpackc.low %vm245_vm3, %vm244_vm14  ;;  %v1492_v16 = vld [vmem:[%s1276_s12 + $0x130] sm:$0xff]  ;;  %v361_v18 = vld [vmem:[%s1276_s12 + $0x1b8] sm:$0xff] }
  0x2c   : > { %vm277_vm5 = vcmp.lt.s32.totalorder %v213_v13, 1024  ;;  %v1423_v29 = vadd.s32 %v1282_v4, %v116_v20  ;;  %v1426_v30 = vadd.s32 %v1282_v4, %v148_v21  ;;  %v165_v33 = vadd.s32 424, %v1293_v8  ;;  %1037 = vmatpush3.bf16.msk.msra.mxu0 %vm1036_vm9, %v1035_v17  ;;  %v329_v13 = vld [vmem:[%s1276_s12 + $0xb8] sm:$0xff] }
  0x2d   : > { %1145 = vxpose.xlu0.b32.cont [4/16] (narrow) %v1144_v9, 8  ;;  %v533_v28 = vsel %vm277_vm5, %v341_v14, 0.0  ;;  %vm262_vm7 = vcmp.lt.s32.totalorder %v198_v24, 1024  ;;  %vm294_vm8 = vcmp.lt.s32.totalorder %v230_v25, 1024  ;;  %v199_v35 = vadd.s32 %v1282_v4, %v133_v22  ;;  %vm1084_vm12 = vmpackc.low %vm277_vm5, %vm276_vm15 }
  0x2e   : > { %v1181_v34 = vpack.i.bf16 %v533_v28, %v501_v23  ;;  %v518_v36 = vsel %vm262_vm7, %v326_v26, 0.0  ;;  %v550_v37 = vsel %vm294_vm8, %v358_v27, 0.0  ;;  %vm246_vm10 = vcmp.lt.s32.totalorder %v1423_v29, 1024  ;;  %1085 = vmatpush3.bf16.msk.msra.mxu1 %vm1084_vm12, %v1083_v7  ;;  %v313_v28 = vld [vmem:[%s1276_s12 + $0x38] sm:$0xff] }
  0x2f   : > { %vm278_vm11 = vcmp.lt.s32.totalorder %v1426_v30, 1024  ;;  %v1146_v39 = vpack.i.bf16 %v550_v37, %v518_v36  ;;  %v502_v40 = vsel %vm246_vm10, %v1429_v31, 0.0  ;;  %v231_v42 = vadd.s32 %v1282_v4, %v165_v33  ;;  %v345_v29 = vld [vmem:[%s1276_s12 + $0x138] sm:$0xff] }
  0x30   : > { %1182 = vxpose.xlu1.b32.cont [4/16] (narrow) %v1181_v34, 8  ;;  %v534_v41 = vsel %vm278_vm11, %v1432_v32, 0.0  ;;  %vm263_vm13 = vcmp.lt.s32.totalorder %v199_v35, 1024  ;;  %v1038_v45 = vpack.c.bf16 %v327_v38, %v326_v26  ;;  %v1086_v46 = vpack.c.bf16 %v359_v43, %v358_v27 }
  0x31   : > { %v1183_v44 = vpack.i.bf16 %v534_v41, %v502_v40  ;;  %1147 = vxpose.xlu0.b32.cont [5/16] (narrow) %v1146_v39, 8  ;;  %vm295_vm14 = vcmp.lt.s32.totalorder %v231_v42, 1024  ;;  %v519_v48 = vsel %vm263_vm13, %v327_v38, 0.0  ;;  %v117_v49 = vadd.s32 40, %v1293_v8  ;;  %vm1039_vm15 = vmpackc.low %vm263_vm13, %vm262_vm7 }
  0x32   : > { %v149_v50 = vadd.s32 296, %v1293_v8  ;;  %v551_v52 = vsel %vm295_vm14, %v359_v43, 0.0  ;;  %v1041_v53 = vpack.c.bf16 %v311_v47, %v1429_v31  ;;  %v1089_v54 = vpack.c.bf16 %v343_v51, %v1432_v32  ;;  %1040 = vmatprep.subr.msk.bf16.mxu0 %vm1039_vm15, %v1038_v45  ;;  %vm1087_vm0 = vmpackc.low %vm295_vm14, %vm294_vm8  ;;  %v362_v45 = vld [vmem:[%s1276_s12 + $0x1c0] sm:$0xff] }
  0x33   : > { %v134_v55 = vadd.s32 176, %v1293_v8  ;;  %v1148_v56 = vpack.i.bf16 %v551_v52, %v519_v48  ;;  %v183_v57 = vadd.s32 %v1282_v4, %v117_v49  ;;  %v166_v59 = vadd.s32 432, %v1293_v8  ;;  %1088 = vmatprep.subr.msk.bf16.mxu1 %vm1087_vm0, %v1086_v46  ;;  %v1539_v49 = vld [vmem:[%s1276_s12 + $0x40] sm:$0xff] }
  0x34   : > { %1184 = vxpose.xlu1.b32.cont [5/16] (narrow) %v1183_v44, 8  ;;  %v215_v58 = vadd.s32 %v1282_v4, %v149_v50  ;;  %v118_v62 = vadd.s32 48, %v1293_v8  ;;  %v150_v63 = vadd.s32 304, %v1293_v8  ;;  %v135_v0 = vadd.s32 184, %v1293_v8  ;;  %v330_v44 = vld [vmem:[%s1276_s12 + $0xc0] sm:$0xff] }
  0x35   : > { %v200_v60 = vadd.s32 %v1282_v4, %v134_v55  ;;  %1149 = vxpose.xlu0.b32.cont [6/16] (narrow) %v1148_v56, 8  ;;  %vm247_vm1 = vcmp.lt.s32.totalorder %v183_v57, 1024  ;;  %v232_v1 = vadd.s32 %v1282_v4, %v166_v59  ;;  %v167_v3 = vadd.s32 440, %v1293_v8  ;;  %v1542_v50 = vld [vmem:[%s1276_s12 + $0x140] sm:$0xff]  ;;  %v331_v56 = vld [vmem:[%s1276_s12 + $0xc8] sm:$0xff] }
  0x36   : > { %vm279_vm2 = vcmp.lt.s32.totalorder %v215_v58, 1024  ;;  %v503_v10 = vsel %vm247_vm1, %v311_v47, 0.0  ;;  %v1480_v5 = vadd.s32 %v1282_v4, %v118_v62  ;;  %vm1042_vm4 = vmpackc.low %vm247_vm1, %vm246_vm10  ;;  %v1489_v15 = vadd.s32 %v1282_v4, %v150_v63 }
  0x37   : > { %v535_v11 = vsel %vm279_vm2, %v343_v51, 0.0  ;;  %vm264_vm3 = vcmp.lt.s32.totalorder %v200_v60, 1024  ;;  %vm296_vm5 = vcmp.lt.s32.totalorder %v232_v1, 1024  ;;  %1043 = vmatpush3.bf16.msk.msra.mxu0 %vm1042_vm4, %v1041_v53  ;;  %vm1090_vm6 = vmpackc.low %vm279_vm2, %vm278_vm11  ;;  %v201_v7 = vadd.s32 %v1282_v4, %v135_v0  ;;  %v315_v1 = vld [vmem:[%s1276_s12 + $0x48] sm:$0xff] }
  0x38   : > { %v1185_v12 = vpack.i.bf16 %v535_v11, %v503_v10  ;;  %v520_v14 = vsel %vm264_vm3, %v328_v61, 0.0  ;;  %v552_v17 = vsel %vm296_vm5, %v360_v2, 0.0  ;;  %vm248_vm7 = vcmp.lt.s32.totalorder %v1480_v5, 1024  ;;  %1091 = vmatpush3.bf16.msk.msra.mxu1 %vm1090_vm6, %v1089_v54  ;;  %v347_v11 = vld [vmem:[%s1276_s12 + $0x148] sm:$0xff] }
  0x39   : > { %v233_v9 = vadd.s32 %v1282_v4, %v167_v3  ;;  %v1150_v19 = vpack.i.bf16 %v552_v17, %v520_v14  ;;  %vm280_vm8 = vcmp.lt.s32.totalorder %v1489_v15, 1024  ;;  %v504_v20 = vsel %vm248_vm7, %v1483_v6, 0.0 }
  0x3a   : > { %1186 = vxpose.xlu1.b32.cont [6/16] (narrow) %v1185_v12, 8  ;;  %v1044_v21 = vpack.c.bf16 %v329_v13, %v328_v61  ;;  %v536_v22 = vsel %vm280_vm8, %v1492_v16, 0.0  ;;  %vm265_vm9 = vcmp.lt.s32.totalorder %v201_v7, 1024  ;;  %v1092_v23 = vpack.c.bf16 %v361_v18, %v360_v2  ;;  %v363_v61 = vld [vmem:[%s1276_s12 + $0x1c8] sm:$0xff] }
  0x3b   : > { %vm297_vm10 = vcmp.lt.s32.totalorder %v233_v9, 1024  ;;  %1151 = vxpose.xlu0.b32.cont [7/16] (narrow) %v1150_v19, 8  ;;  %v1187_v24 = vpack.i.bf16 %v536_v22, %v504_v20  ;;  %v521_v25 = vsel %vm265_vm9, %v329_v13, 0.0  ;;  %v119_v27 = vadd.s32 56, %v1293_v8  ;;  %vm1045_vm11 = vmpackc.low %vm265_vm9, %vm264_vm3  ;;  %v332_v13 = vld [vmem:[%s1276_s12 + $0xd0] sm:$0xff] }
  0x3c   : > { %v553_v26 = vsel %vm297_vm10, %v361_v18, 0.0  ;;  %v151_v31 = vadd.s32 312, %v1293_v8  ;;  %v1047_v32 = vpack.c.bf16 %v313_v28, %v1483_v6  ;;  %v1095_v33 = vpack.c.bf16 %v345_v29, %v1492_v16  ;;  %1046 = vmatprep.subr.msk.bf16.mxu0 %vm1045_vm11, %v1044_v21  ;;  %vm1093_vm12 = vmpackc.low %vm297_vm10, %vm296_vm5  ;;  %v364_v22 = vld [vmem:[%s1276_s12 + $0x1d0] sm:$0xff] }
  0x3d   : > { %v1152_v30 = vpack.i.bf16 %v553_v26, %v521_v25  ;;  %v185_v34 = vadd.s32 %v1282_v4, %v119_v27  ;;  %v136_v35 = vadd.s32 192, %v1293_v8  ;;  %v168_v36 = vadd.s32 448, %v1293_v8  ;;  %1094 = vmatprep.subr.msk.bf16.mxu1 %vm1093_vm12, %v1092_v23  ;;  %v1587_v27 = vld [vmem:[%s1276_s12 + $0x50] sm:$0xff] }
  0x3e   : > { %1188 = vxpose.xlu1.b32.cont [7/16] (narrow) %v1187_v24, 8  ;;  %v120_v37 = vadd.s32 64, %v1293_v8  ;;  %v217_v38 = vadd.s32 %v1282_v4, %v151_v31  ;;  %v152_v39 = vadd.s32 320, %v1293_v8  ;;  %v137_v40 = vadd.s32 200, %v1293_v8  ;;  %v1596_v31 = vld [vmem:[%s1276_s12 + $0x150] sm:$0xff] }
  0x3f   : > { %v169_v41 = vadd.s32 456, %v1293_v8  ;;  %1153 = vxpose.xlu0.b32.cont [8/16] (narrow) %v1152_v30, 8  ;;  %vm249_vm13 = vcmp.lt.s32.totalorder %v185_v34, 1024  ;;  %v202_v42 = vadd.s32 %v1282_v4, %v136_v35  ;;  %v234_v43 = vadd.s32 %v1282_v4, %v168_v36  ;;  %v333_v35 = vld [vmem:[%s1276_s12 + $0xd8] sm:$0xff] }
  0x40   : > { %v1533_v46 = vadd.s32 %v1282_v4, %v120_v37  ;;  %vm281_vm14 = vcmp.lt.s32.totalorder %v217_v38, 1024  ;;  %v505_v47 = vsel %vm249_vm13, %v313_v28, 0.0  ;;  %v1536_v48 = vadd.s32 %v1282_v4, %v152_v39  ;;  %vm1048_vm15 = vmpackc.low %vm249_vm13, %vm248_vm7  ;;  %v365_v36 = vld [vmem:[%s1276_s12 + $0x1d8] sm:$0xff] }
  0x41   : > { %v203_v51 = vadd.s32 %v1282_v4, %v137_v40  ;;  %v537_v52 = vsel %vm281_vm14, %v345_v29, 0.0  ;;  %vm266_vm0 = vcmp.lt.s32.totalorder %v202_v42, 1024  ;;  %vm298_vm1 = vcmp.lt.s32.totalorder %v234_v43, 1024  ;;  %1049 = vmatpush3.bf16.msk.msra.mxu0 %vm1048_vm15, %v1047_v32  ;;  %vm1096_vm3 = vmpackc.low %vm281_vm14, %vm280_vm8 }
  0x42   : > { %vm250_vm2 = vcmp.lt.s32.totalorder %v1533_v46, 1024  ;;  %v1189_v53 = vpack.i.bf16 %v537_v52, %v505_v47  ;;  %v522_v54 = vsel %vm266_vm0, %v330_v44, 0.0  ;;  %v554_v55 = vsel %vm298_vm1, %v362_v45, 0.0  ;;  %1097 = vmatpush3.bf16.msk.msra.mxu1 %vm1096_vm3, %v1095_v33  ;;  %v317_v46 = vld [vmem:[%s1276_s12 + $0x58] sm:$0xff] }
  0x43   : > { %vm282_vm4 = vcmp.lt.s32.totalorder %v1536_v48, 1024  ;;  %v1154_v57 = vpack.i.bf16 %v554_v55, %v522_v54  ;;  %v506_v58 = vsel %vm250_vm2, %v1539_v49, 0.0  ;;  %v235_v60 = vadd.s32 %v1282_v4, %v169_v41  ;;  %v349_v47 = vld [vmem:[%s1276_s12 + $0x158] sm:$0xff] }
  0x44   : > { %v538_v59 = vsel %vm282_vm4, %v1542_v50, 0.0  ;;  %1190 = vxpose.xlu1.b32.cont [8/16] (narrow) %v1189_v53, 8  ;;  %vm267_vm5 = vcmp.lt.s32.totalorder %v203_v51, 1024  ;;  %v1050_v63 = vpack.c.bf16 %v331_v56, %v330_v44  ;;  %v1098_v0 = vpack.c.bf16 %v363_v61, %v362_v45 }
  0x45   : > { %v1191_v62 = vpack.i.bf16 %v538_v59, %v506_v58  ;;  %1155 = vxpose.xlu0.b32.cont [9/16] (narrow) %v1154_v57, 8  ;;  %vm299_vm6 = vcmp.lt.s32.totalorder %v235_v60, 1024  ;;  %v523_v2 = vsel %vm267_vm5, %v331_v56, 0.0  ;;  %v121_v3 = vadd.s32 72, %v1293_v8  ;;  %vm1051_vm7 = vmpackc.low %vm267_vm5, %vm266_vm0 }
  0x46   : > { %v153_v10 = vadd.s32 328, %v1293_v8  ;;  %v555_v5 = vsel %vm299_vm6, %v363_v61, 0.0  ;;  %v1053_v6 = vpack.c.bf16 %v315_v1, %v1539_v49  ;;  %v1101_v12 = vpack.c.bf16 %v347_v11, %v1542_v50  ;;  %1052 = vmatprep.subr.msk.bf16.mxu0 %vm1051_vm7, %v1050_v63  ;;  %vm1099_vm8 = vmpackc.low %vm299_vm6, %vm298_vm1  ;;  %v366_v63 = vld [vmem:[%s1276_s12 + $0x1e0] sm:$0xff] }
  0x47   : > { %v138_v14 = vadd.s32 208, %v1293_v8  ;;  %v1156_v15 = vpack.i.bf16 %v555_v5, %v523_v2  ;;  %v187_v16 = vadd.s32 %v1282_v4, %v121_v3  ;;  %v170_v7 = vadd.s32 464, %v1293_v8  ;;  %1100 = vmatprep.subr.msk.bf16.mxu1 %vm1099_vm8, %v1098_v0  ;;  %v1643_v3 = vld [vmem:[%s1276_s12 + $0x60] sm:$0xff] }
  0x48   : > { %v219_v17 = vadd.s32 %v1282_v4, %v153_v10  ;;  %1192 = vxpose.xlu1.b32.cont [9/16] (narrow) %v1191_v62, 8  ;;  %v122_v18 = vadd.s32 80, %v1293_v8  ;;  %v154_v19 = vadd.s32 336, %v1293_v8  ;;  %v139_v20 = vadd.s32 216, %v1293_v8  ;;  %v334_v62 = vld [vmem:[%s1276_s12 + $0xe0] sm:$0xff] }
  0x49   : > { %v204_v9 = vadd.s32 %v1282_v4, %v138_v14  ;;  %1157 = vxpose.xlu0.b32.cont [10/16] (narrow) %v1156_v15, 8  ;;  %vm251_vm9 = vcmp.lt.s32.totalorder %v187_v16, 1024  ;;  %v236_v21 = vadd.s32 %v1282_v4, %v170_v7  ;;  %v171_v23 = vadd.s32 472, %v1293_v8  ;;  %v1646_v10 = vld [vmem:[%s1276_s12 + $0x160] sm:$0xff]  ;;  %v335_v15 = vld [vmem:[%s1276_s12 + $0xe8] sm:$0xff] }
  0x4a   : > { %vm283_vm10 = vcmp.lt.s32.totalorder %v219_v17, 1024  ;;  %v507_v24 = vsel %vm251_vm9, %v315_v1, 0.0  ;;  %v1584_v26 = vadd.s32 %v1282_v4, %v122_v18  ;;  %vm1054_vm12 = vmpackc.low %vm251_vm9, %vm250_vm2  ;;  %v1593_v30 = vadd.s32 %v1282_v4, %v154_v19 }
  0x4b   : > { %v539_v25 = vsel %vm283_vm10, %v347_v11, 0.0  ;;  %vm268_vm11 = vcmp.lt.s32.totalorder %v204_v9, 1024  ;;  %vm300_vm13 = vcmp.lt.s32.totalorder %v236_v21, 1024  ;;  %1055 = vmatpush3.bf16.msk.msra.mxu0 %vm1054_vm12, %v1053_v6  ;;  %vm1102_vm14 = vmpackc.low %vm283_vm10, %vm282_vm4  ;;  %v205_v33 = vadd.s32 %v1282_v4, %v139_v20  ;;  %v319_v21 = vld [vmem:[%s1276_s12 + $0x68] sm:$0xff] }
  0x4c   : > { %v1193_v28 = vpack.i.bf16 %v539_v25, %v507_v24  ;;  %v524_v29 = vsel %vm268_vm11, %v332_v13, 0.0  ;;  %v556_v32 = vsel %vm300_vm13, %v364_v22, 0.0  ;;  %vm252_vm15 = vcmp.lt.s32.totalorder %v1584_v26, 1024  ;;  %1103 = vmatpush3.bf16.msk.msra.mxu1 %vm1102_vm14, %v1101_v12  ;;  %v351_v25 = vld [vmem:[%s1276_s12 + $0x168] sm:$0xff] }
  0x4d   : > { %v237_v34 = vadd.s32 %v1282_v4, %v171_v23  ;;  %v1158_v37 = vpack.i.bf16 %v556_v32, %v524_v29  ;;  %vm284_vm0 = vcmp.lt.s32.totalorder %v1593_v30, 1024  ;;  %v508_v38 = vsel %vm252_vm15, %v1587_v27, 0.0 }
  0x4e   : > { %1194 = vxpose.xlu1.b32.cont [10/16] (narrow) %v1193_v28, 8  ;;  %v1056_v39 = vpack.c.bf16 %v333_v35, %v332_v13  ;;  %v540_v40 = vsel %vm284_vm0, %v1596_v31, 0.0  ;;  %vm269_vm1 = vcmp.lt.s32.totalorder %v205_v33, 1024  ;;  %v1104_v41 = vpack.c.bf16 %v365_v36, %v364_v22  ;;  %v367_v13 = vld [vmem:[%s1276_s12 + $0x1e8] sm:$0xff] }
  0x4f   : > { %vm301_vm2 = vcmp.lt.s32.totalorder %v237_v34, 1024  ;;  %1159 = vxpose.xlu0.b32.cont [11/16] (narrow) %v1158_v37, 8  ;;  %v1195_v42 = vpack.i.bf16 %v540_v40, %v508_v38  ;;  %v525_v43 = vsel %vm269_vm1, %v333_v35, 0.0  ;;  %v123_v45 = vadd.s32 88, %v1293_v8  ;;  %vm1057_vm3 = vmpackc.low %vm269_vm1, %vm268_vm11  ;;  %v336_v35 = vld [vmem:[%s1276_s12 + $0xf0] sm:$0xff] }
  0x50   : > { %v557_v44 = vsel %vm301_vm2, %v365_v36, 0.0  ;;  %v155_v49 = vadd.s32 344, %v1293_v8  ;;  %v1059_v50 = vpack.c.bf16 %v317_v46, %v1587_v27  ;;  %v1107_v51 = vpack.c.bf16 %v349_v47, %v1596_v31  ;;  %1058 = vmatprep.subr.msk.bf16.mxu0 %vm1057_vm3, %v1056_v39  ;;  %vm1105_vm4 = vmpackc.low %vm301_vm2, %vm300_vm13  ;;  %v368_v40 = vld [vmem:[%s1276_s12 + $0x1f0] sm:$0xff] }
  0x51   : > { %v1160_v48 = vpack.i.bf16 %v557_v44, %v525_v43  ;;  %v189_v52 = vadd.s32 %v1282_v4, %v123_v45  ;;  %v140_v53 = vadd.s32 224, %v1293_v8  ;;  %v172_v54 = vadd.s32 480, %v1293_v8  ;;  %1106 = vmatprep.subr.msk.bf16.mxu1 %vm1105_vm4, %v1104_v41  ;;  %v320_v45 = vld [vmem:[%s1276_s12 + $0x70] sm:$0xff] }
  0x52   : > { %1196 = vxpose.xlu1.b32.cont [11/16] (narrow) %v1195_v42, 8  ;;  %v124_v55 = vadd.s32 96, %v1293_v8  ;;  %v221_v56 = vadd.s32 %v1282_v4, %v155_v49  ;;  %v156_v57 = vadd.s32 352, %v1293_v8  ;;  %v141_v58 = vadd.s32 232, %v1293_v8  ;;  %v352_v49 = vld [vmem:[%s1276_s12 + $0x170] sm:$0xff] }
  0x53   : > { %v173_v59 = vadd.s32 488, %v1293_v8  ;;  %1161 = vxpose.xlu0.b32.cont [12/16] (narrow) %v1160_v48, 8  ;;  %vm253_vm5 = vcmp.lt.s32.totalorder %v189_v52, 1024  ;;  %v206_v60 = vadd.s32 %v1282_v4, %v140_v53  ;;  %v238_v61 = vadd.s32 %v1282_v4, %v172_v54  ;;  %v337_v53 = vld [vmem:[%s1276_s12 + $0xf8] sm:$0xff] }
  0x54   : > { %v1637_v0 = vadd.s32 %v1282_v4, %v124_v55  ;;  %vm285_vm6 = vcmp.lt.s32.totalorder %v221_v56, 1024  ;;  %v509_v1 = vsel %vm253_vm5, %v317_v46, 0.0  ;;  %v1640_v2 = vadd.s32 %v1282_v4, %v156_v57  ;;  %vm1060_vm7 = vmpackc.low %vm253_vm5, %vm252_vm15  ;;  %v369_v54 = vld [vmem:[%s1276_s12 + $0x1f8] sm:$0xff] }
  0x55   : > { %v207_v11 = vadd.s32 %v1282_v4, %v141_v58  ;;  %v541_v5 = vsel %vm285_vm6, %v349_v47, 0.0  ;;  %vm270_vm8 = vcmp.lt.s32.totalorder %v206_v60, 1024  ;;  %vm302_vm9 = vcmp.lt.s32.totalorder %v238_v61, 1024  ;;  %1061 = vmatpush3.bf16.msk.msra.mxu0 %vm1060_vm7, %v1059_v50  ;;  %vm1108_vm11 = vmpackc.low %vm285_vm6, %vm284_vm0 }
  0x56   : > { %vm254_vm10 = vcmp.lt.s32.totalorder %v1637_v0, 1024  ;;  %v1197_v6 = vpack.i.bf16 %v541_v5, %v509_v1  ;;  %v526_v12 = vsel %vm270_vm8, %v334_v62, 0.0  ;;  %v558_v14 = vsel %vm302_vm9, %v366_v63, 0.0  ;;  %1109 = vmatpush3.bf16.msk.msra.mxu1 %vm1108_vm11, %v1107_v51 }
  0x57   : > { %vm286_vm12 = vcmp.lt.s32.totalorder %v1640_v2, 1024  ;;  %v1162_v16 = vpack.i.bf16 %v558_v14, %v526_v12  ;;  %v510_v17 = vsel %vm254_vm10, %v1643_v3, 0.0  ;;  %v239_v9 = vadd.s32 %v1282_v4, %v173_v59  ;;  %v321_v2 = vld [vmem:[%s1276_s12 + $0x78] sm:$0xff] }
  0x58   : > { %v542_v7 = vsel %vm286_vm12, %v1646_v10, 0.0  ;;  %1198 = vxpose.xlu1.b32.cont [12/16] (narrow) %v1197_v6, 8  ;;  %vm271_vm13 = vcmp.lt.s32.totalorder %v207_v11, 1024  ;;  %v1062_v19 = vpack.c.bf16 %v335_v15, %v334_v62  ;;  %v1110_v20 = vpack.c.bf16 %v367_v13, %v366_v63 }
  0x59   : > { %v1199_v18 = vpack.i.bf16 %v542_v7, %v510_v17  ;;  %1163 = vxpose.xlu0.b32.cont [13/16] (narrow) %v1162_v16, 8  ;;  %vm303_vm14 = vcmp.lt.s32.totalorder %v239_v9, 1024  ;;  %v527_v22 = vsel %vm271_vm13, %v335_v15, 0.0  ;;  %v125_v23 = vadd.s32 104, %v1293_v8  ;;  %vm1063_vm15 = vmpackc.low %vm271_vm13, %vm270_vm8 }
  0x5a   : > { %v157_v24 = vadd.s32 360, %v1293_v8  ;;  %v559_v26 = vsel %vm303_vm14, %v367_v13, 0.0  ;;  %v1065_v27 = vpack.c.bf16 %v319_v21, %v1643_v3  ;;  %v1113_v28 = vpack.c.bf16 %v351_v25, %v1646_v10  ;;  %1064 = vmatprep.subr.msk.bf16.mxu0 %vm1063_vm15, %v1062_v19  ;;  %vm1111_vm0 = vmpackc.low %vm303_vm14, %vm302_vm9  ;;  %v353_v10 = vld [vmem:[%s1276_s12 + $0x178] sm:$0xff] }
  0x5b   : > { %v142_v29 = vadd.s32 240, %v1293_v8  ;;  %v1164_v30 = vpack.i.bf16 %v559_v26, %v527_v22  ;;  %v191_v31 = vadd.s32 %v1282_v4, %v125_v23  ;;  %v174_v33 = vadd.s32 496, %v1293_v8  ;;  %1112 = vmatprep.subr.msk.bf16.mxu1 %vm1111_vm0, %v1110_v20  ;;  %v562_v23 = vld [vmem:[#allocation2] sm:$0xff] }
  0x5c   : > { %v223_v32 = vadd.s32 %v1282_v4, %v157_v24  ;;  %1200 = vxpose.xlu1.b32.cont [13/16] (narrow) %v1199_v18, 8  ;;  %v126_v36 = vadd.s32 112, %v1293_v8  ;;  %v158_v37 = vadd.s32 368, %v1293_v8  ;;  %v143_v38 = vadd.s32 248, %v1293_v8 }
  0x5d   : > { %v208_v34 = vadd.s32 %v1282_v4, %v142_v29  ;;  %1165 = vxpose.xlu0.b32.cont [14/16] (narrow) %v1164_v30, 8  ;;  %vm255_vm1 = vcmp.lt.s32.totalorder %v191_v31, 1024  ;;  %v240_v39 = vadd.s32 %v1282_v4, %v174_v33  ;;  %v175_v41 = vadd.s32 504, %v1293_v8 }
  0x5e   : > { %vm287_vm2 = vcmp.lt.s32.totalorder %v223_v32, 1024  ;;  %v511_v42 = vsel %vm255_vm1, %v319_v21, 0.0  ;;  %v192_v44 = vadd.s32 %v1282_v4, %v126_v36  ;;  %vm1066_vm4 = vmpackc.low %vm255_vm1, %vm254_vm10  ;;  %v224_v48 = vadd.s32 %v1282_v4, %v158_v37 }
  0x5f   : > { %v543_v43 = vsel %vm287_vm2, %v351_v25, 0.0  ;;  %vm272_vm3 = vcmp.lt.s32.totalorder %v208_v34, 1024  ;;  %vm304_vm5 = vcmp.lt.s32.totalorder %v240_v39, 1024  ;;  %1067 = vmatpush3.bf16.msk.msra.mxu0 %vm1066_vm4, %v1065_v27  ;;  %vm1114_vm6 = vmpackc.low %vm287_vm2, %vm286_vm12  ;;  %v209_v51 = vadd.s32 %v1282_v4, %v143_v38 }
  0x60   : > { %v1201_v46 = vpack.i.bf16 %v543_v43, %v511_v42  ;;  %v528_v47 = vsel %vm272_vm3, %v336_v35, 0.0  ;;  %v560_v50 = vsel %vm304_vm5, %v368_v40, 0.0  ;;  %vm256_vm7 = vcmp.lt.s32.totalorder %v192_v44, 1024  ;;  %1115 = vmatpush3.bf16.msk.msra.mxu1 %vm1114_vm6, %v1113_v28 }
  0x61   : > { %v241_v52 = vadd.s32 %v1282_v4, %v175_v41  ;;  %v1166_v55 = vpack.i.bf16 %v560_v50, %v528_v47  ;;  %vm288_vm8 = vcmp.lt.s32.totalorder %v224_v48, 1024  ;;  %v512_v56 = vsel %vm256_vm7, %v320_v45, 0.0 }
  0x62   : > { %1202 = vxpose.xlu1.b32.cont [14/16] (narrow) %v1201_v46, 8  ;;  %v1068_v57 = vpack.c.bf16 %v337_v53, %v336_v35  ;;  %v544_v58 = vsel %vm288_vm8, %v352_v49, 0.0  ;;  %vm273_vm9 = vcmp.lt.s32.totalorder %v209_v51, 1024  ;;  %v1116_v59 = vpack.c.bf16 %v369_v54, %v368_v40 }
  0x63   : > { %vm305_vm10 = vcmp.lt.s32.totalorder %v241_v52, 1024  ;;  %1167 = vxpose.xlu0.b32.cont [15/16] (narrow) %v1166_v55, 8  ;;  %v1203_v60 = vpack.i.bf16 %v544_v58, %v512_v56  ;;  %v529_v61 = vsel %vm273_vm9, %v337_v53, 0.0  ;;  %v127_v63 = vadd.s32 120, %v1293_v8  ;;  %vm1069_vm12 = vmpackc.low %vm273_vm9, %vm272_vm3 }
  0x64   : > { %v561_v62 = vsel %vm305_vm10, %v369_v54, 0.0  ;;  %vm1117_vm11 = vmpackc.low %vm305_vm10, %vm304_vm5  ;;  %v159_v1 = vadd.s32 376, %v1293_v8  ;;  %v1071_v11 = vpack.c.bf16 %v321_v2, %v320_v45  ;;  %1070 = vmatprep.subr.msk.bf16.mxu0 %vm1069_vm12, %v1068_v57  ;;  %v1119_v6 = vpack.c.bf16 %v353_v10, %v352_v49 }
  0x65   : > { %v1168_v0 = vpack.i.bf16 %v561_v62, %v529_v61  ;;  %1118 = vmatprep.subr.msk.bf16.mxu1 %vm1117_vm11, %v1116_v59  ;;  %v193_v3 = vadd.s32 %v1282_v4, %v127_v63  ;;  %vm832_vm1 = vcmask 64512  }
  0x66   : > { %1204 = vxpose.xlu1.b32.cont [15/16] (narrow) %v1203_v60, 8  ;;  %v225_v5 = vadd.s32 %v1282_v4, %v159_v1 }
  0x67   : > { %1169 = vxpose.xlu0.b32.end [16/16] (narrow) %v1168_v0, 8  ;;  %vm257_vm13 = vcmp.lt.s32.totalorder %v193_v3, 1024 }
  0x68   : > { %vm289_vm14 = vcmp.lt.s32.totalorder %v225_v5, 1024  ;;  %v513_v12 = vsel %vm257_vm13, %v321_v2, 0.0  ;;  %vm1072_vm15 = vmpackc.low %vm257_vm13, %vm256_vm7 }
  0x69   : > { %v545_v8 = vsel %vm289_vm14, %v353_v10, 0.0  ;;  %1073 = vmatpush3.bf16.msk.msra.mxu0 %vm1072_vm15, %v1071_v11  ;;  %vm1120_vm0 = vmpackc.low %vm289_vm14, %vm288_vm8 }
  0x6a   : > { %v1205_v14 = vpack.i.bf16 %v545_v8, %v513_v12  ;;  %1121 = vmatpush3.bf16.msk.msra.mxu1 %vm1120_vm0, %v1119_v6 }
  0x6c   : > { %1206 = vxpose.xlu1.b32.end [16/16] (narrow) %v1205_v14, 8 }
  0xab   : > { %v1170_v15 = vpop.trf.xlu0 }
  0xac   : > { %v1171_v16 = vunpack.i.l.bf16 %v1170_v15  ;;  %v1174_v17 = vunpack.i.h.bf16 %v1170_v15 }
  0xae   : > { %755 = vmatprep.mubr.f32.mxu0 %v1171_v16  ;;  %825 = vmatprep.mubr.f32.mxu1 %v1174_v17 }
  0xb0   : > { %v1207_v4 = vpop.trf.xlu1 }
  0xb1   : > { %v1211_v7 = vunpack.i.h.bf16 %v1207_v4  ;;  %v1208_v9 = vunpack.i.l.bf16 %v1207_v4 }
  0xb3   : > { %756 = vmatmul.mubr.f32.vlgmr.msra.gmra.mrb[0].mxu0 %v1208_v9  ;;  %826 = vmatmul.mubr.f32.vlgmr.msra.gmra.mrb[0].mxu1 %v1211_v7 }
 0x186   : > { %v988_v13 = vpop.f32.mrb[0].mxu0  ;;  %v1023_v18 = vpop.f32.mrb[0].mxu1 }
 0x187   : > { %v989_v19 = vpop.f32.mrb[1].mxu0  ;;  %v1024_v20 = vpop.f32.mrb[1].mxu1 }
 0x188   : > { %v990_v21 = vadd.f32 %v989_v19, %v988_v13  ;;  %v1025_v22 = vadd.f32 %v1024_v20, %v1023_v18 }
 0x18a   : > { %v828_v24 = vadd.f32 %v1025_v22, %v990_v21 }
 0x18c   : > { %v831_v25 = vadd.f32 %v828_v24, %v562_v23 }
 0x18e   : > { %833 = vst.msk [vmem:[#allocation2] sm:$0xff] %vm832_vm1, %v831_v25 }
 0x18f   : > { %1225 = shalt.err (!%p1222_p12)
}
 0x190   : > { %s1226_s19 = scalar_lea.hbm %s1741_s1, 128 }
 0x191   : > { %p1227_p13 = scmp.ne.s32.totalorder %s1741_s1, %s1226_s19  ;;  %p1232_p2 = scmp.lt.u32.totalorder %s1226_s19, %s1741_s1 }
 0x193   : > { %p1228_p0 = pnand %p1227_p13, %p1126_p5 }
 0x195   : > { %p1229_p1 = pneg %p1228_p0 }
 0x197   : > { %p1234_p3 = pnand %p1232_p2, %p1229_p1 }
 0x199   : > { %1237 = shalt.err (!%p1234_p3)
}
 0x19a   : > { %1123 = dma.vmem_to_hbm [thread:$0]  (%p1126_p5), %s842_s15, 128, %s1741_s1, [#allocation3]  }
 0x19b   : > { %1243 = dma.done.wait (%p1126_p5), [#allocation3], 128  }
 0x19c   : > { %1245 = vsyncadd (%p1126_p5), [#allocation3], 4294967168 }
 0x19d PF: > { %s12_s6 = sadd.s32 1, %s1248_s6  }
 0x19e   : > { %p9_p4 = scmp.ge.s32.totalorder %s12_s6, 4  }
 0x1a0   :  { %11 = sbr.rel (!%p9_p4) target bundleno = 1 (0x1), region = 55 }
 0x1a7   :  { %854 = vsyncpa [#allocation3], 1 }
 0x1a8   :  { %856 = vsyncpa [#allocation3 + $0x1], 1 }

</bundles_post_ra>
